<compile_context>
chip_gen: v5e
topology: v5e:2x2
jax: 0.10.0
libtpu: 0.0.40
codegen_flags: <defaults>
</compile_context>

<pallas_src>
import jax
import jax.numpy as jnp
from jax.experimental import pallas as pl
from jax.experimental.pallas import tpu as pltpu


def _dma_copy_kernel(x_hbm_ref, o_hbm_ref, sem):
    # Single HBM -> HBM DMA.  Zero compute, so there is nothing to overlap:
    # start the transfer and block on its completion semaphore.
    cp = pltpu.make_async_copy(x_hbm_ref, o_hbm_ref, sem)
    cp.start()
    cp.wait()


@jax.jit
def _pallas_materialized_copy(x: jax.Array) -> jax.Array:
    """Fresh-buffer copy of `x` via a direct HBM->HBM DMA Pallas kernel.

    NOT used on the forward hot path (which is a zero-cost passthrough);
    provided only for callers that explicitly need an independent buffer.
    Jitted so the rank-normalizing reshape below stays metadata-only.
    """
    orig_shape = x.shape
    if x.size == 0:
        return x  # nothing to copy

    # DMA engines want a rank >= 1 region; 0-d arrays get a (1,) view
    # (layout-metadata only under jit).
    xv = x.reshape((1,)) if x.ndim == 0 else x

    nbytes = int(xv.size) * jnp.dtype(xv.dtype).itemsize
    out = pl.pallas_call(
        _dma_copy_kernel,
        out_shape=jax.ShapeDtypeStruct(xv.shape, xv.dtype),
        in_specs=[pl.BlockSpec(memory_space=pl.ANY)],    # raw HBM ref, no auto-DMA
        out_specs=pl.BlockSpec(memory_space=pl.ANY),     # raw HBM ref, no auto-DMA
        scratch_shapes=[pltpu.SemaphoreType.DMA],        # DMA completion semaphore
        cost_estimate=pl.CostEstimate(
            flops=0, transcendentals=0, bytes_accessed=2 * nbytes),
    )(xv)

    return out.reshape(orig_shape)


def embedder_placeholder_forward(x=None, inputs_embeds=None, *args, **kwargs):
    """JAX equivalent of embedder_placeholder.forward.

    Pure passthrough — no kernel launch, no HBM round trip.
    Use `_pallas_materialized_copy` only if a fresh buffer is truly required.
    """
    if x is not None:
        return x
    return inputs_embeds


if __name__ == "__main__":
    key = jax.random.PRNGKey(0)
    k1, k2 = jax.random.split(key)

    # Small shapes consistent with an embedder: (batch, seq, hidden)
    x = jax.random.normal(k1, (2, 8, 32), dtype=jnp.float32)
    inputs_embeds = jax.random.normal(k2, (2, 8, 32), dtype=jnp.float32)

    # Branch 1: x is provided -> returns x (zero-cost passthrough).
    out_x = embedder_placeholder_forward(x=x, inputs_embeds=inputs_embeds)
    out_x = jax.block_until_ready(out_x)
    assert out_x.shape == x.shape and out_x.dtype == x.dtype
    assert jnp.array_equal(out_x, x)

    # Branch 2: only inputs_embeds is provided -> returns inputs_embeds.
    out_e = embedder_placeholder_forward(x=None, inputs_embeds=inputs_embeds)
    out_e = jax.block_until_ready(out_e)
    assert out_e.shape == inputs_embeds.shape and out_e.dtype == inputs_embeds.dtype
    assert jnp.array_equal(out_e, inputs_embeds)

    # Exercise the Pallas HBM->HBM DMA copy kernel (lane-friendly shape).
    out_c = jax.block_until_ready(_pallas_materialized_copy(x))
    assert out_c.shape == x.shape and out_c.dtype == x.dtype
    assert jnp.array_equal(out_c, x)

    # Non-128-multiple element count / small last dim — layout-agnostic DMA path.
    y = jax.random.normal(k2, (3, 5, 20), dtype=jnp.float32)
    out_y = jax.block_until_ready(_pallas_materialized_copy(y))
    assert jnp.array_equal(out_y, y)

    # Degenerate shapes flagged in the review: last-dim == 1 and 0-d scalar.
    z = jax.random.normal(k1, (7, 1), dtype=jnp.float32)
    out_z = jax.block_until_ready(_pallas_materialized_copy(z))
    assert jnp.array_equal(out_z, z)

    s = jnp.float32(3.5)
    out_s = jax.block_until_ready(_pallas_materialized_copy(s))
    assert out_s.shape == () and jnp.array_equal(out_s, s)

    print("KERNEL_OK")
</pallas_src>

<mosaic_0001>
module attributes {stable_mosaic.version = 11 : i64} {
  func.func @_dma_copy_kernel(%arg0: memref<2x8x32xf32, #tpu.memory_space<any>>, %arg1: memref<2x8x32xf32, #tpu.memory_space<any>>, %arg2: memref<!tpu.dma_semaphore, #tpu.memory_space<semaphore_mem>>) attributes {dimension_semantics = [], scalar_prefetch = 0 : i64, scratch_operands = 1 : i64, tpu.core_type = #tpu.core_type<tc>} {
    tpu.enqueue_dma source(%arg0 : memref<2x8x32xf32, #tpu.memory_space<any>>) target(%arg1 : memref<2x8x32xf32, #tpu.memory_space<any>>) target_semaphore(%arg2 : memref<!tpu.dma_semaphore, #tpu.memory_space<semaphore_mem>>)
    tpu.wait_dma2 semaphore(%arg2 : memref<!tpu.dma_semaphore, #tpu.memory_space<semaphore_mem>>) src(%arg0 : memref<2x8x32xf32, #tpu.memory_space<any>>) dst(%arg1 : memref<2x8x32xf32, #tpu.memory_space<any>>)
    return
  }
}

</mosaic_0001>

<bundles_post_ra>
// kernel: _pallas_materialized_copy.1
= control target key start
LH: loop header
LB: loop body
LE: loop exit
PB: predicated region body
PF: predicated region fallthrough
CT: control target
= control target key end

     0   :  { %s33_s12 = smov [#allocation2]   ;;  %s34_s13 = smov [#allocation3]   ;;  %s52_s0 = inlined_call_operand.hbm [shape: f32[2,8,32], index: 0, kind: input, shape index: {}]   ;;  %s53_s1 = inlined_call_operand.hbm [shape: f32[2,8,32], index: 1, kind: output, shape index: {}]  }
   0x1   :  { %s10_s8 = sshll.u32 %s52_s0, 4  ;;  %s12_s11 = sshll.u32 %s53_s1, 4  ;;  %s11_s8 = int_to_ptr.hbm [resolvable:$true] %s10_s8  ;;  %s13_s11 = int_to_ptr.hbm [resolvable:$true] %s12_s11 }
   0x2   :  { %s35_s14 = smov 0  }
   0x3   :  { %16 = dma.general %s11_s8, 256, %s13_s11, %s33_s12, %s34_s13, [#allocation4], %s35_s14, 0  }
   0x4   :  { %31 = dma.done.wait [#allocation2], 256 }
   0x5   :  { %32 = vsyncadd [#allocation2], 4294967040 }
   0x6   :  { %21 = vsyncmov [#allocation2] }
   0x9   :  { %s22_s15 = vpop.sfrf %21 }
   0xa   :  { %p27_p0 = scmp.ne.s32.totalorder %s22_s15, 0 }
   0xc   :  { %26 = shalt.err (%p27_p0)  }

</bundles_post_ra>
